<compile_context>
chip_gen: v5e
topology: v5e:2x2
jax: 0.10.0
libtpu: 0.0.40
codegen_flags: <defaults>
</compile_context>

<pallas_src>
import functools
import math

import jax
import jax.numpy as jnp
from jax.experimental import pallas as pl
from jax.experimental.pallas import tpu as pltpu

SMOOTH = 1e-5  # module default
P_EXP = 2      # module default; kernel hardcodes p=2 (p*p + t*t)

_ROW_TILE = 32  # rows processed per inner slice (bounds vreg pressure)


def _dice_kernel(p_ref, t_ref, num_ref, den_ref, *, tk, rem, cpc, num_chunks):
    """Accumulate lane-shaped partial num/den sums for one (core, chunk)."""
    c = pl.program_id(0)           # core-split axis ("parallel")
    k = pl.program_id(1)           # reduction-chunk axis ("arbitrary")
    rows = p_ref.shape[0]

    @pl.when(k == 0)
    def _():
        num_ref[...] = jnp.zeros_like(num_ref)
        den_ref[...] = jnp.zeros_like(den_ref)

    def acc(start, width):
        # Stream one lane-slice, row-tiled so at most (32, 128) f32 is live.
        for r0 in range(0, rows, _ROW_TILE):
            rt = min(rows, r0 + _ROW_TILE) - r0
            p = p_ref[pl.ds(r0, rt), pl.ds(start, width)].astype(jnp.float32)
            t = t_ref[pl.ds(r0, rt), pl.ds(start, width)].astype(jnp.float32)
            num_ref[pl.ds(r0, rt), pl.ds(0, width)] += p * t
            den_ref[pl.ds(r0, rt), pl.ds(0, width)] += p * p + t * t

    def acc_span(lanes):
        # Accumulate lanes [0, lanes) of this block (lanes is a static int).
        n_full, part = lanes // 128, lanes % 128
        if n_full > 0:
            if n_full <= 16:
                for s in range(n_full):          # small: fully static unroll
                    acc(s * 128, 128)
            else:
                def body(s, carry):
                    acc(pl.multiple_of(s * 128, 128), 128)
                    return carry
                jax.lax.fori_loop(0, n_full, body, 0)
        if part:
            # Exact-width partial slice: all loaded lanes are real data, so no
            # iota/where masking is needed anywhere.
            acc(n_full * 128, part)

    if rem == tk:
        # No tail chunk exists: one unconditional fast path.
        acc_span(tk)
    else:
        gidx = c * cpc + k                       # global chunk index
        @pl.when(gidx != num_chunks - 1)
        def _():
            acc_span(tk)                         # full, unmasked chunks
        @pl.when(gidx == num_chunks - 1)
        def _():
            acc_span(rem)                        # tail chunk only


def _choose_fold(n, d, itemsize):
    """Pick g (dividing d) folding the batch into sublanes: rows = n*g."""
    pack = max(8, 32 // itemsize)                # f32: 8, bf16: 16, int8: 32
    best_g, best_score = 1, None
    for g in range(1, max(1, 64 // n) + 1):      # keep rows <= 64
        if d % g:
            continue
        rows, dg = n * g, d // g
        score = (rows % pack == 0,               # full sublane-pack occupancy
                 dg % 128 == 0,                  # lane aligned -> no tail
                 rows)                           # then: bigger rows
        if best_score is None or score > best_score:
            best_g, best_score = g, score
    return best_g


@functools.partial(jax.jit, static_argnames=("reduction",))
def binary_dice_loss(predict, target, reduction="mean"):
    """Pallas impl of BinaryDiceLoss(smooth=1e-5, p=2)."""
    n = predict.shape[0]
    d = math.prod(predict.shape[1:])
    itemsize = jnp.dtype(predict.dtype).itemsize

    g = _choose_fold(n, d, itemsize)
    rows, dg = n * g, d // g

    p2 = predict.reshape(rows, dg)               # native dtype, free reshape
    t2 = target.reshape(rows, dg)

    # ~5 MiB per input per pipeline buffer => ~20 MiB total input buffering:
    # fits v7x's 64 MiB VMEM and amortizes per-grid-step overhead everywhere.
    block_budget = 5 * 1024 * 1024
    max_tk = max(128, (block_budget // (rows * itemsize)) // 128 * 128)

    if dg <= max_tk:
        tk, num_chunks = dg, 1
    else:
        tk = max_tk
        num_chunks = -(-dg // tk)
        if num_chunks % 2 == 1:
            # Prefer an even chunk count so the stream can be split 2-way
            # across TensorCores (v7x megacore); harmless on v5e/v6e.
            per = -(-dg // (num_chunks + 1))
            tk_alt = -(-per // 128) * 128
            chunks_alt = -(-dg // tk_alt)
            if 128 <= tk_alt <= max_tk and chunks_alt >= 2 and chunks_alt % 2 == 0:
                tk, num_chunks = tk_alt, chunks_alt

    ncs = 2 if num_chunks % 2 == 0 else 1        # cores sharing the stream
    cpc = num_chunks // ncs                      # chunks per core
    rem = dg - (num_chunks - 1) * tk             # valid width of last chunk

    kernel = functools.partial(_dice_kernel, tk=tk, rem=rem, cpc=cpc,
                               num_chunks=num_chunks)

    num_part, den_part = pl.pallas_call(
        kernel,
        out_shape=(
            jax.ShapeDtypeStruct((rows, 128 * ncs), jnp.float32),
            jax.ShapeDtypeStruct((rows, 128 * ncs), jnp.float32),
        ),
        grid_spec=pltpu.PrefetchScalarGridSpec(
            num_scalar_prefetch=0,
            grid=(ncs, cpc),
            in_specs=[
                pl.BlockSpec((rows, tk), lambda c, k: (0, c * cpc + k)),
                pl.BlockSpec((rows, tk), lambda c, k: (0, c * cpc + k)),
            ],
            out_specs=[
                pl.BlockSpec((rows, 128), lambda c, k: (0, c)),
                pl.BlockSpec((rows, 128), lambda c, k: (0, c)),
            ],
        ),
        compiler_params=pltpu.CompilerParams(
            dimension_semantics=("parallel", "arbitrary"),
            vmem_limit_bytes=40 * 1024 * 1024,
        ),
        cost_estimate=pl.CostEstimate(
            flops=7 * n * d,
            transcendentals=0,
            bytes_accessed=2 * n * d * itemsize + 2 * rows * 128 * ncs * 4,
        ),
    )(p2, t2)

    # Tiny finalize in the wrapper (per perf review): cross-lane + per-sample
    # group sums, smoothing, ratio and reduction.
    num = num_part.sum(axis=1).reshape(n, g).sum(axis=1) + SMOOTH
    den = den_part.sum(axis=1).reshape(n, g).sum(axis=1) + SMOOTH
    loss = 1.0 - num / den
    if reduction == "mean":
        return jnp.mean(loss)
    elif reduction == "sum":
        return jnp.sum(loss)
    elif reduction == "none":
        return loss
    else:
        raise ValueError(f"Unexpected reduction {reduction}")


def _reference(predict, target):
    n = predict.shape[0]
    p2 = predict.reshape(n, -1).astype(jnp.float32)
    t2 = target.reshape(n, -1).astype(jnp.float32)
    num = jnp.sum(p2 * t2, axis=1) + SMOOTH
    den = jnp.sum(p2 ** P_EXP + t2 ** P_EXP, axis=1) + SMOOTH
    return jnp.mean(1.0 - num / den)


if __name__ == "__main__":
    key = jax.random.PRNGKey(0)
    k1, k2 = jax.random.split(key)
    # predict: sigmoid-like probabilities, target: binary mask; NCHW layout.
    x_shape = (2, 4, 16, 16)
    predict = jax.nn.sigmoid(jax.random.normal(k1, x_shape, dtype=jnp.float32))
    target = (jax.random.uniform(k2, x_shape) > 0.5).astype(jnp.float32)

    loss = binary_dice_loss(predict, target)
    loss = jax.block_until_ready(loss)

    ref = _reference(predict, target)
    assert jnp.allclose(loss, ref, atol=1e-5, rtol=1e-5), (loss, ref)
    print("KERNEL_OK")
</pallas_src>

<mosaic_0001>
module attributes {stable_mosaic.version = 11 : i64} {
  func.func @_dice_kernel(%arg0: i32, %arg1: i32, %arg2: memref<16x128xf32, #tpu.memory_space<vmem>>, %arg3: memref<16x128xf32, #tpu.memory_space<vmem>>, %arg4: memref<16x128xf32, #tpu.memory_space<vmem>>, %arg5: memref<16x128xf32, #tpu.memory_space<vmem>>) attributes {dimension_semantics = [#tpu.dimension_semantics<parallel>, #tpu.dimension_semantics<arbitrary>], iteration_bounds = array<i64: 1, 1>, scalar_prefetch = 0 : i64, scratch_operands = 0 : i64, tpu.core_type = #tpu.core_type<tc>, window_params = [{transform_indices = @transform_0, window_bounds = array<i64: 16, 128>}, {transform_indices = @transform_1, window_bounds = array<i64: 16, 128>}, {transform_indices = @transform_2, window_bounds = array<i64: 16, 128>}, {transform_indices = @transform_3, window_bounds = array<i64: 16, 128>}]} {
    %c0_i32 = arith.constant 0 : i32
    %0 = arith.cmpi eq, %arg1, %c0_i32 : i32
    %1 = arith.extui %0 : i1 to i32
    %c0_i32_0 = arith.constant 0 : i32
    %2 = arith.cmpi ne, %1, %c0_i32_0 : i32
    scf.if %2 {
      %cst = arith.constant 0.000000e+00 : f32
      %15 = vector.broadcast %cst : f32 to vector<16x128xf32>
      %c0_12 = arith.constant 0 : index
      %c0_13 = arith.constant 0 : index
      %16 = vector.load %arg4[%c0_12, %c0_13] : memref<16x128xf32, #tpu.memory_space<vmem>>, vector<16x128xf32>
      tpu.vector_store %arg4[%c0_12, %c0_13], %15 {strides = array<i32>} : memref<16x128xf32, #tpu.memory_space<vmem>>, vector<16x128xf32>,
      %cst_14 = arith.constant 0.000000e+00 : f32
      %17 = vector.broadcast %cst_14 : f32 to vector<16x128xf32>
      %c0_15 = arith.constant 0 : index
      %c0_16 = arith.constant 0 : index
      %18 = vector.load %arg5[%c0_15, %c0_16] : memref<16x128xf32, #tpu.memory_space<vmem>>, vector<16x128xf32>
      tpu.vector_store %arg5[%c0_15, %c0_16], %17 {strides = array<i32>} : memref<16x128xf32, #tpu.memory_space<vmem>>, vector<16x128xf32>,
    } else {
    }
    %c0 = arith.constant 0 : index
    %c0_1 = arith.constant 0 : index
    %3 = vector.load %arg2[%c0, %c0_1] : memref<16x128xf32, #tpu.memory_space<vmem>>, vector<16x128xf32>
    %c0_2 = arith.constant 0 : index
    %c0_3 = arith.constant 0 : index
    %4 = vector.load %arg3[%c0_2, %c0_3] : memref<16x128xf32, #tpu.memory_space<vmem>>, vector<16x128xf32>
    %c0_4 = arith.constant 0 : index
    %c0_5 = arith.constant 0 : index
    %5 = vector.load %arg4[%c0_4, %c0_5] : memref<16x128xf32, #tpu.memory_space<vmem>>, vector<16x128xf32>
    %6 = arith.mulf %3, %4 : vector<16x128xf32>
    %7 = arith.addf %5, %6 : vector<16x128xf32>
    %c0_6 = arith.constant 0 : index
    %c0_7 = arith.constant 0 : index
    %8 = vector.load %arg4[%c0_6, %c0_7] : memref<16x128xf32, #tpu.memory_space<vmem>>, vector<16x128xf32>
    tpu.vector_store %arg4[%c0_6, %c0_7], %7 {strides = array<i32>} : memref<16x128xf32, #tpu.memory_space<vmem>>, vector<16x128xf32>,
    %c0_8 = arith.constant 0 : index
    %c0_9 = arith.constant 0 : index
    %9 = vector.load %arg5[%c0_8, %c0_9] : memref<16x128xf32, #tpu.memory_space<vmem>>, vector<16x128xf32>
    %10 = arith.mulf %3, %3 : vector<16x128xf32>
    %11 = arith.mulf %4, %4 : vector<16x128xf32>
    %12 = arith.addf %10, %11 : vector<16x128xf32>
    %13 = arith.addf %9, %12 : vector<16x128xf32>
    %c0_10 = arith.constant 0 : index
    %c0_11 = arith.constant 0 : index
    %14 = vector.load %arg5[%c0_10, %c0_11] : memref<16x128xf32, #tpu.memory_space<vmem>>, vector<16x128xf32>
    tpu.vector_store %arg5[%c0_10, %c0_11], %13 {strides = array<i32>} : memref<16x128xf32, #tpu.memory_space<vmem>>, vector<16x128xf32>,
    return
  }
  func.func @transform_0(%arg0: i32, %arg1: i32) -> (i32, i32) {
    %c1_i32 = arith.constant 1 : i32
    %0 = arith.muli %arg0, %c1_i32 : i32
    %1 = arith.addi %0, %arg1 : i32
    %c0_i32 = arith.constant 0 : i32
    %c0_i32_0 = arith.constant 0 : i32
    return %c0_i32, %1 : i32, i32
  }
  func.func @transform_1(%arg0: i32, %arg1: i32) -> (i32, i32) {
    %c1_i32 = arith.constant 1 : i32
    %0 = arith.muli %arg0, %c1_i32 : i32
    %1 = arith.addi %0, %arg1 : i32
    %c0_i32 = arith.constant 0 : i32
    %c0_i32_0 = arith.constant 0 : i32
    return %c0_i32, %1 : i32, i32
  }
  func.func @transform_2(%arg0: i32, %arg1: i32) -> (i32, i32) {
    %c0_i32 = arith.constant 0 : i32
    %c0_i32_0 = arith.constant 0 : i32
    return %c0_i32, %arg0 : i32, i32
  }
  func.func @transform_3(%arg0: i32, %arg1: i32) -> (i32, i32) {
    %c0_i32 = arith.constant 0 : i32
    %c0_i32_0 = arith.constant 0 : i32
    return %c0_i32, %arg0 : i32, i32
  }
}

</mosaic_0001>

<bundles_post_ra>
// kernel: binary_dice_loss.1
= control target key start
LH: loop header
LB: loop body
LE: loop exit
PB: predicated region body
PF: predicated region fallthrough
CT: control target
= control target key end

     0   :  { %s144_s0 = inlined_call_operand.vmem [shape: f32[16,128], index: 0, kind: input, shape index: {}]   ;;  %s145_s1 = inlined_call_operand.vmem [shape: f32[16,128], index: 1, kind: input, shape index: {}]   ;;  %s146_s2 = inlined_call_operand.vmem [shape: f32[16,128], index: 2, kind: output, shape index: {0}]   ;;  %s147_s3 = inlined_call_operand.vmem [shape: f32[16,128], index: 3, kind: output, shape index: {1}]  }
   0x1   :  { %v55_v0 = vld [vmem:[%s144_s0] sm:$0xff]  ;;  %v56_v2 = vld [vmem:[%s144_s0 + $0x8] sm:$0xff] }
   0x2   :  { %v57_v1 = vld [vmem:[%s145_s1] sm:$0xff]  ;;  %v58_v4 = vld [vmem:[%s145_s1 + $0x8] sm:$0xff]  ;;  %v69_v5 = vmul.f32 %v55_v0, %v55_v0  ;;  %v70_v7 = vmul.f32 %v56_v2, %v56_v2 }
   0x3   :  { %v61_v3 = vmul.f32 %v57_v1, %v55_v0  ;;  %v71_v6 = vmul.f32 %v57_v1, %v57_v1  ;;  %v62_v8 = vmul.f32 %v58_v4, %v56_v2  ;;  %v72_v9 = vmul.f32 %v58_v4, %v58_v4 }
   0x5   :  { %v73_v10 = vadd.f32 %v71_v6, %v69_v5  ;;  %v74_v11 = vadd.f32 %v72_v9, %v70_v7  ;;  %65 = vst [vmem:[%s146_s2] sm:$0xff] %v61_v3 }
   0x6   :  { %66 = vst [vmem:[%s146_s2 + $0x8] sm:$0xff] %v62_v8 }
   0x7   :  { %77 = vst [vmem:[%s147_s3] sm:$0xff] %v73_v10 }
   0x8   :  { %78 = vst [vmem:[%s147_s3 + $0x8] sm:$0xff] %v74_v11 }

</bundles_post_ra>
